<compile_context>
chip_gen: v7x
topology: tpu7x:2x2x1
jax: 0.10.0
libtpu: 0.0.40
codegen_flags: <defaults>
</compile_context>

<pallas_src>
import functools

import jax
import jax.numpy as jnp
from jax.experimental import pallas as pl
from jax.experimental.pallas import tpu as pltpu

LEAKY_SLOPE = 0.01   # torch.nn.LeakyReLU default negative_slope
LN_EPS = 1e-5        # torch.nn.LayerNorm default eps


def _round_up(n, m):
    return ((n + m - 1) // m) * m


def _leaky(v):
    # mul+max instead of cmp+mul+select
    return jnp.maximum(v, LEAKY_SLOPE * v)


def _global_model_kernel(batch_ref, xt_ref, u_ref, w_ref, p_ref,
                         out_ref, seg_ref, cnt_ref, *,
                         fu, fx, hidden, out, ob, oc, od, chunk):
    """One grid step = one TILE_N slab of nodes (nodes on the LANE axis).

    batch_ref : (1, TILE_N) int32   graph id per node (padded nodes = -1)
    xt_ref    : (fx, TILE_N)        node features, transposed / lane-dense
                                    (padded node columns are zero)
    u_ref     : (B, fu) f32         global features (resident across the grid)
    w_ref     : packed weights      rows [0,fu)=W0_u, [ob,ob+fx)=W0_x,
                                    [oc,oc+hidden)=W1, [od,od+hidden)=W2
    p_ref     : (5, max(hidden,out)) rows = b0, b1, b2, gamma, beta
    seg_ref   : (B, fx) f32         segment-sum accumulator
    cnt_ref   : (B, 1)  f32         per-graph node-count accumulator
    """
    i = pl.program_id(0)
    B = u_ref.shape[0]
    tile_n = xt_ref.shape[1]
    n_chunks = tile_n // chunk            # static

    @pl.when(i == 0)
    def _():
        seg_ref[...] = jnp.zeros_like(seg_ref)
        cnt_ref[...] = jnp.zeros_like(cnt_ref)

    # scatter_mean numerator + denominator, chunked so the (B, chunk) one-hot
    # and its intermediates stay in vregs (review item 8).  The iota is
    # hoisted out of the loop (JAX does not CSE broadcast_in_dim).
    graph_ids = jax.lax.broadcasted_iota(jnp.int32, (B, chunk), 0)
    seg = jnp.zeros((B, fx), jnp.float32)
    cnt = jnp.zeros((B, 1), jnp.float32)
    for c in range(n_chunks):                      # static, fully unrolled
        lo = c * chunk                             # aligned static offset
        b_c = batch_ref[:, lo:lo + chunk]          # (1, chunk) graph ids
        x_c = xt_ref[:, lo:lo + chunk]             # (fx, chunk) lane-dense
        onehot = (graph_ids == b_c).astype(x_c.dtype)          # (B, chunk)
        # contraction over the node/lane axis of both operands (same 'nt'
        # orientation the MXU handles for q @ k.T); padded columns contribute
        # zero (batch id -1 never matches, x tail is explicit zeros).
        seg = seg + jnp.einsum('bn,fn->bf', onehot, x_c,
                               preferred_element_type=jnp.float32)
        cnt = cnt + jnp.sum(onehot.astype(jnp.float32), axis=1, keepdims=True)
    seg_ref[...] += seg
    cnt_ref[...] += cnt

    # Tiny MLP + LayerNorm only on the last grid step (negligible vs the scan).
    @pl.when(i == pl.num_programs(0) - 1)
    def _():
        # counts are small integers: keep the exact divide (no approx recip).
        means = seg_ref[...] / jnp.maximum(cnt_ref[...], 1.0)       # (B, fx)

        # first linear on concat([u, means]) via the split-weight sum
        h = (jnp.dot(u_ref[...], w_ref[0:fu, 0:hidden],
                     preferred_element_type=jnp.float32)
             + jnp.dot(means, w_ref[ob:ob + fx, 0:hidden],
                       preferred_element_type=jnp.float32)
             + p_ref[0:1, 0:hidden])
        h = _leaky(h)

        h = jnp.dot(h, w_ref[oc:oc + hidden, 0:hidden],
                    preferred_element_type=jnp.float32) + p_ref[1:2, 0:hidden]
        h = _leaky(h)

        h = jnp.dot(h, w_ref[od:od + hidden, 0:out],
                    preferred_element_type=jnp.float32) + p_ref[2:3, 0:out]
        h = _leaky(h)                                               # activate_last

        # layer_norm=True : LayerNorm over the out_size axis (f32 statistics)
        mu = jnp.mean(h, axis=-1, keepdims=True)
        var = jnp.mean((h - mu) ** 2, axis=-1, keepdims=True)
        h = (h - mu) * jax.lax.rsqrt(var + LN_EPS)
        h = h * p_ref[3:4, 0:out] + p_ref[4:5, 0:out]

        out_ref[...] = h.astype(out_ref.dtype)


def global_model_forward(x, edge_index, edge_attr, u, batch, params, *,
                         tile_n=None, chunk_n=2048, x_dtype=jnp.float32):
    """out = MLP(concat([u, scatter_mean(x, batch)], 1)); LeakyReLU on every
    layer and LayerNorm(out_size).  edge_index / edge_attr are unused by this
    block (kept for signature parity with the PyTorch forward).

    On v5e pass x_dtype=jnp.bfloat16 to halve the dominant HBM stream
    (accumulation stays f32 via preferred_element_type)."""
    del edge_index, edge_attr
    N, Fx = x.shape
    B, Fu = u.shape
    hidden = params["w1"].shape[0]
    out_size = params["w2"].shape[1]

    # ---- node tiling: big lane-dense tiles (review items 1 & 3) ----
    if tile_n is None:
        tile_n = min(32768, _round_up(max(N, 1), 512))
    tile_n = _round_up(tile_n, 256)
    chunk = min(chunk_n, tile_n)
    tile_n = _round_up(tile_n, chunk)           # static in-kernel chunk loop
    n_pad = _round_up(max(N, 1), tile_n)
    num_tiles = n_pad // tile_n

    # Single fused transpose+pad pass: x becomes (Fx, n_pad) so nodes ride the
    # lane axis (full-lane DMA, ~16-32x smaller VMEM tiles).  Padded node
    # columns are zero, so they can never inject NaN into the MXU accumulate.
    # In a real pipeline keep x transposed upstream and drop this copy.
    x_t = jnp.pad(x.astype(x_dtype).T, ((0, 0), (0, n_pad - N)))
    # batch on the LANE axis, shape (1, n_pad); padded nodes get id -1 so they
    # never match a graph id.  Out-of-range ids are dropped (segment_sum
    # semantics; PyTorch scatter would raise instead).
    batch_row = jnp.pad(batch.astype(jnp.int32), (0, n_pad - N),
                        constant_values=-1).reshape(1, n_pad)

    # ---- pack all parameters into two arrays (2 DMAs instead of 10) ----
    wmax = max(hidden, out_size)

    def seg_pad(a, rows):
        a = a.astype(jnp.float32)
        return jnp.pad(a, ((0, rows - a.shape[0]), (0, wmax - a.shape[1])))

    r_u, r_x, r_h = _round_up(Fu, 8), _round_up(Fx, 8), _round_up(hidden, 8)
    ob = r_u
    oc = ob + r_x
    od = oc + r_h
    w0 = params["w0"]
    w_packed = jnp.concatenate([
        seg_pad(w0[:Fu, :], r_u),      # W0_u  rows [0, r_u)
        seg_pad(w0[Fu:, :], r_x),      # W0_x  rows [ob, ob+r_x)
        seg_pad(params["w1"], r_h),    # W1    rows [oc, oc+r_h)
        seg_pad(params["w2"], r_h),    # W2    rows [od, od+r_h)
    ], axis=0)
    p_packed = jnp.concatenate([
        seg_pad(params["b0"], 1), seg_pad(params["b1"], 1),
        seg_pad(params["b2"], 1), seg_pad(params["gamma"], 1),
        seg_pad(params["beta"], 1)], axis=0)                 # (5, wmax)

    kernel = functools.partial(
        _global_model_kernel, fu=Fu, fx=Fx, hidden=hidden, out=out_size,
        ob=ob, oc=oc, od=od, chunk=chunk)

    grid_spec = pltpu.PrefetchScalarGridSpec(
        num_scalar_prefetch=0,
        grid=(num_tiles,),
        in_specs=[
            pl.BlockSpec((1, tile_n), lambda i: (0, i)),       # batch ids (lanes)
            pl.BlockSpec((Fx, tile_n), lambda i: (0, i)),      # x transposed slab
            # Constant block index -> Pallas keeps these resident and does not
            # re-issue the DMA per step; if a trace ever shows otherwise,
            # stage them into scratch with a one-time copy at pid==0.
            pl.BlockSpec((B, Fu), lambda i: (0, 0)),           # u (resident)
            pl.BlockSpec(w_packed.shape, lambda i: (0, 0)),    # packed weights
            pl.BlockSpec(p_packed.shape, lambda i: (0, 0)),    # packed biases/LN
        ],
        out_specs=pl.BlockSpec((B, out_size), lambda i: (0, 0)),
        scratch_shapes=[pltpu.VMEM((B, Fx), jnp.float32),      # segment sums
                        pltpu.VMEM((B, 1), jnp.float32)],      # node counts
    )

    return pl.pallas_call(
        kernel,
        out_shape=jax.ShapeDtypeStruct((B, out_size), jnp.float32),
        grid_spec=grid_spec,
        compiler_params=pltpu.CompilerParams(
            # single grid axis is a node-reduction with a resident accumulator
            dimension_semantics=("arbitrary",),
            # portable ceiling (fits v7x's scoped VMEM); with the lane-dense
            # transposed layout the working set is a few MiB, so this is not
            # binding even at tile_n=32768.
            vmem_limit_bytes=32 * 1024 * 1024),
    )(batch_row, x_t, u.astype(jnp.float32), w_packed, p_packed)


def init_params(key, in_size, out_size, n_hidden, hidden_size):
    """Deterministic parameter init (n_hidden=2 -> 3 Linear layers + LayerNorm)."""
    assert n_hidden == 2, "this script instantiates the module with n_hidden=2"
    ks = jax.random.split(key, 6)

    def lin(kw, kb, fan_in, fan_out):
        bound = 1.0 / jnp.sqrt(fan_in)
        w = jax.random.uniform(kw, (fan_in, fan_out), jnp.float32, -bound, bound)
        b = jax.random.uniform(kb, (1, fan_out), jnp.float32, -bound, bound)
        return w, b

    w0, b0 = lin(ks[0], ks[1], in_size, hidden_size)
    w1, b1 = lin(ks[2], ks[3], hidden_size, hidden_size)
    w2, b2 = lin(ks[4], ks[5], hidden_size, out_size)
    gamma = jnp.ones((1, out_size), jnp.float32)
    beta = jnp.zeros((1, out_size), jnp.float32)
    return dict(w0=w0, b0=b0, w1=w1, b1=b1, w2=w2, b2=b2, gamma=gamma, beta=beta)


def _reference(x, u, batch, params, num_graphs):
    """Plain-JAX reference mirroring the PyTorch forward."""
    seg_sum = jax.ops.segment_sum(x, batch, num_segments=num_graphs)
    counts = jax.ops.segment_sum(jnp.ones((x.shape[0], 1), x.dtype), batch,
                                 num_segments=num_graphs)
    means = seg_sum / jnp.maximum(counts, 1.0)
    h = jnp.concatenate([u, means], axis=1)

    def leaky(v):
        return jnp.where(v > 0, v, LEAKY_SLOPE * v)

    h = leaky(h @ params["w0"] + params["b0"])
    h = leaky(h @ params["w1"] + params["b1"])
    h = h @ params["w2"] + params["b2"]
    h = leaky(h)
    mu = jnp.mean(h, axis=-1, keepdims=True)
    var = jnp.mean((h - mu) ** 2, axis=-1, keepdims=True)
    h = (h - mu) * jax.lax.rsqrt(var + LN_EPS)
    return h * params["gamma"] + params["beta"]


if __name__ == "__main__":
    key = jax.random.PRNGKey(0)
    B, N = 2, 8              # 2 graphs, 8 nodes total
    Fx, Fu = 4, 4            # node-feature / global-feature widths
    hidden, out_size, n_hidden = 32, 16, 2
    in_size = Fu + Fx        # MLP input is concat([u, scatter_mean(x)])

    kx, ku, kp = jax.random.split(key, 3)
    x = jax.random.normal(kx, (N, Fx), jnp.float32)
    u = jax.random.normal(ku, (B, Fu), jnp.float32)
    batch = jnp.array([0, 0, 0, 0, 1, 1, 1, 1], jnp.int32)
    edge_index = jnp.zeros((2, 4), jnp.int32)    # unused by this block
    edge_attr = jnp.zeros((4, 3), jnp.float32)   # unused by this block

    # graph ids must lie in [0, B): out-of-range ids are silently dropped by
    # the one-hot, whereas a PyTorch scatter would index-error.
    assert bool(jnp.all((batch >= 0) & (batch < B))), "graph ids must lie in [0, B)"

    params = init_params(kp, in_size, out_size, n_hidden, hidden)

    out = global_model_forward(x, edge_index, edge_attr, u, batch, params)
    out = jax.block_until_ready(out)

    ref = _reference(x, u, batch, params, B)
    assert out.shape == (B, out_size)
    assert jnp.allclose(out, ref, atol=1e-4, rtol=1e-4), "mismatch vs JAX reference"

    print("KERNEL_OK")
</pallas_src>

<mosaic_0001>
module attributes {stable_mosaic.version = 11 : i64} {
  func.func @_global_model_kernel(%arg0: i32, %arg1: memref<1x512xi32, #tpu.memory_space<vmem>>, %arg2: memref<4x512xf32, #tpu.memory_space<vmem>>, %arg3: memref<2x4xf32, #tpu.memory_space<vmem>>, %arg4: memref<80x32xf32, #tpu.memory_space<vmem>>, %arg5: memref<5x32xf32, #tpu.memory_space<vmem>>, %arg6: memref<2x16xf32, #tpu.memory_space<vmem>>, %arg7: memref<2x4xf32, #tpu.memory_space<vmem>>, %arg8: memref<2x1xf32, #tpu.memory_space<vmem>>) attributes {dimension_semantics = [#tpu.dimension_semantics<arbitrary>], iteration_bounds = array<i64: 1>, scalar_prefetch = 0 : i64, scratch_operands = 2 : i64, tpu.core_type = #tpu.core_type<tc>, window_params = [{transform_indices = @transform_0, window_bounds = array<i64: 1, 512>}, {transform_indices = @transform_1, window_bounds = array<i64: 4, 512>}, {pipeline_mode = #tpu.pipeline_mode<synchronous>, transform_indices = @transform_2, window_bounds = array<i64: 2, 4>}, {pipeline_mode = #tpu.pipeline_mode<synchronous>, transform_indices = @transform_3, window_bounds = array<i64: 80, 32>}, {pipeline_mode = #tpu.pipeline_mode<synchronous>, transform_indices = @transform_4, window_bounds = array<i64: 5, 32>}, {pipeline_mode = #tpu.pipeline_mode<synchronous>, transform_indices = @transform_5, window_bounds = array<i64: 2, 16>}]} {
    %c0_i32 = arith.constant 0 : i32
    %0 = arith.cmpi eq, %arg0, %c0_i32 : i32
    %1 = arith.extui %0 : i1 to i32
    %c0_i32_0 = arith.constant 0 : i32
    %2 = arith.cmpi ne, %1, %c0_i32_0 : i32
    scf.if %2 {
      %cst_17 = arith.constant 0.000000e+00 : f32
      %26 = vector.broadcast %cst_17 : f32 to vector<2x4xf32>
      %c0_18 = arith.constant 0 : index
      %c0_19 = arith.constant 0 : index
      %27 = vector.load %arg7[%c0_18, %c0_19] : memref<2x4xf32, #tpu.memory_space<vmem>>, vector<2x4xf32>
      tpu.vector_store %arg7[%c0_18, %c0_19], %26 {strides = array<i32>} : memref<2x4xf32, #tpu.memory_space<vmem>>, vector<2x4xf32>,
      %cst_20 = arith.constant 0.000000e+00 : f32
      %28 = vector.broadcast %cst_20 : f32 to vector<2x1xf32>
      %c0_21 = arith.constant 0 : index
      %c0_22 = arith.constant 0 : index
      %29 = vector.load %arg8[%c0_21, %c0_22] : memref<2x1xf32, #tpu.memory_space<vmem>>, vector<2x1xf32>
      tpu.vector_store %arg8[%c0_21, %c0_22], %28 {strides = array<i32>} : memref<2x1xf32, #tpu.memory_space<vmem>>, vector<2x1xf32>,
    } else {
    }
    %3 = tpu.iota {dimensions = array<i32: 0>} : vector<2x512xi32>
    %cst = arith.constant 0.000000e+00 : f32
    %4 = vector.broadcast %cst : f32 to vector<2x4xf32>
    %cst_1 = arith.constant 0.000000e+00 : f32
    %5 = vector.broadcast %cst_1 : f32 to vector<2x1xf32>
    %c0 = arith.constant 0 : index
    %c0_2 = arith.constant 0 : index
    %6 = vector.load %arg1[%c0, %c0_2] : memref<1x512xi32, #tpu.memory_space<vmem>>, vector<1x512xi32>
    %c0_3 = arith.constant 0 : index
    %c0_4 = arith.constant 0 : index
    %7 = vector.load %arg2[%c0_3, %c0_4] : memref<4x512xf32, #tpu.memory_space<vmem>>, vector<4x512xf32>
    %8 = vector.broadcast %6 : vector<1x512xi32> to vector<2x512xi32>
    %9 = arith.cmpi eq, %3, %8 : vector<2x512xi32>
    %10 = arith.extui %9 : vector<2x512xi1> to vector<2x512xi32>
    %11 = arith.sitofp %10 : vector<2x512xi32> to vector<2x512xf32>
    "tpu.trace_start"() <{level = 10 : i32, message = "bn,fn->bf"}> : () -> ()
    %cst_5 = arith.constant dense<0.000000e+00> : vector<2x4xf32>
    %12 = tpu.matmul %11, %7, %cst_5 {dimension_numbers = #tpu.dot_dimension_numbers<[1], [1], [0], [0], [0, 0, 1, 0], [], []>} : vector<2x512xf32>, vector<4x512xf32>, vector<2x4xf32> -> vector<2x4xf32>
    "tpu.trace_stop"() : () -> ()
    %13 = arith.addf %4, %12 : vector<2x4xf32>
    %cst_6 = arith.constant dense<0.000000e+00> : vector<2xf32>
    %14 = vector.multi_reduction <add>, %11, %cst_6 [1] : vector<2x512xf32> to vector<2xf32>
    %15 = vector.shape_cast %14 : vector<2xf32> to vector<2x1xf32>
    %16 = arith.addf %5, %15 : vector<2x1xf32>
    %c0_7 = arith.constant 0 : index
    %c0_8 = arith.constant 0 : index
    %17 = vector.load %arg7[%c0_7, %c0_8] : memref<2x4xf32, #tpu.memory_space<vmem>>, vector<2x4xf32>
    %18 = arith.addf %17, %13 : vector<2x4xf32>
    %c0_9 = arith.constant 0 : index
    %c0_10 = arith.constant 0 : index
    %19 = vector.load %arg7[%c0_9, %c0_10] : memref<2x4xf32, #tpu.memory_space<vmem>>, vector<2x4xf32>
    tpu.vector_store %arg7[%c0_9, %c0_10], %18 {strides = array<i32>} : memref<2x4xf32, #tpu.memory_space<vmem>>, vector<2x4xf32>,
    %c0_11 = arith.constant 0 : index
    %c0_12 = arith.constant 0 : index
    %20 = vector.load %arg8[%c0_11, %c0_12] : memref<2x1xf32, #tpu.memory_space<vmem>>, vector<2x1xf32>
    %21 = arith.addf %20, %16 : vector<2x1xf32>
    %c0_13 = arith.constant 0 : index
    %c0_14 = arith.constant 0 : index
    %22 = vector.load %arg8[%c0_13, %c0_14] : memref<2x1xf32, #tpu.memory_space<vmem>>, vector<2x1xf32>
    tpu.vector_store %arg8[%c0_13, %c0_14], %21 {strides = array<i32>} : memref<2x1xf32, #tpu.memory_space<vmem>>, vector<2x1xf32>,
    %c0_i32_15 = arith.constant 0 : i32
    %23 = arith.cmpi eq, %arg0, %c0_i32_15 : i32
    %24 = arith.extui %23 : i1 to i32
    %c0_i32_16 = arith.constant 0 : i32
    %25 = arith.cmpi ne, %24, %c0_i32_16 : i32
    scf.if %25 {
      %c0_17 = arith.constant 0 : index
      %c0_18 = arith.constant 0 : index
      %26 = vector.load %arg7[%c0_17, %c0_18] : memref<2x4xf32, #tpu.memory_space<vmem>>, vector<2x4xf32>
      %c0_19 = arith.constant 0 : index
      %c0_20 = arith.constant 0 : index
      %27 = vector.load %arg8[%c0_19, %c0_20] : memref<2x1xf32, #tpu.memory_space<vmem>>, vector<2x1xf32>
      %cst_21 = arith.constant 1.000000e+00 : f32
      %28 = vector.broadcast %cst_21 : f32 to vector<2x1xf32>
      %29 = arith.maximumf %27, %28 : vector<2x1xf32>
      %30 = vector.broadcast %29 : vector<2x1xf32> to vector<2x4xf32>
      %31 = arith.divf %26, %30 : vector<2x4xf32>
      %c0_22 = arith.constant 0 : index
      %c0_23 = arith.constant 0 : index
      %32 = vector.load %arg3[%c0_22, %c0_23] : memref<2x4xf32, #tpu.memory_space<vmem>>, vector<2x4xf32>
      %c0_24 = arith.constant 0 : index
      %c0_25 = arith.constant 0 : index
      %33 = vector.load %arg4[%c0_24, %c0_25] : memref<80x32xf32, #tpu.memory_space<vmem>>, vector<4x32xf32>
      %cst_26 = arith.constant dense<0.000000e+00> : vector<2x32xf32>
      %34 = tpu.matmul %32, %33, %cst_26 {dimension_numbers = #tpu.dot_dimension_numbers<[1], [0], [0], [1], [0, 0, 1, 1], [], []>} : vector<2x4xf32>, vector<4x32xf32>, vector<2x32xf32> -> vector<2x32xf32>
      %c8 = arith.constant 8 : index
      %c0_27 = arith.constant 0 : index
      %35 = vector.load %arg4[%c8, %c0_27] : memref<80x32xf32, #tpu.memory_space<vmem>>, vector<4x32xf32>
      %cst_28 = arith.constant dense<0.000000e+00> : vector<2x32xf32>
      %36 = tpu.matmul %31, %35, %cst_28 {dimension_numbers = #tpu.dot_dimension_numbers<[1], [0], [0], [1], [0, 0, 1, 1], [], []>} : vector<2x4xf32>, vector<4x32xf32>, vector<2x32xf32> -> vector<2x32xf32>
      %37 = arith.addf %34, %36 : vector<2x32xf32>
      %c0_29 = arith.constant 0 : index
      %c0_30 = arith.constant 0 : index
      %38 = vector.load %arg5[%c0_29, %c0_30] : memref<5x32xf32, #tpu.memory_space<vmem>>, vector<1x32xf32>
      %39 = vector.broadcast %38 : vector<1x32xf32> to vector<2x32xf32>
      %40 = arith.addf %37, %39 : vector<2x32xf32>
      %cst_31 = arith.constant 0.00999999977 : f32
      %41 = vector.broadcast %cst_31 : f32 to vector<2x32xf32>
      %42 = arith.mulf %41, %40 : vector<2x32xf32>
      %43 = arith.maximumf %40, %42 : vector<2x32xf32>
      %c16 = arith.constant 16 : index
      %c0_32 = arith.constant 0 : index
      %44 = vector.load %arg4[%c16, %c0_32] : memref<80x32xf32, #tpu.memory_space<vmem>>, vector<32x32xf32>
      %cst_33 = arith.constant dense<0.000000e+00> : vector<2x32xf32>
      %45 = tpu.matmul %43, %44, %cst_33 {dimension_numbers = #tpu.dot_dimension_numbers<[1], [0], [0], [1], [0, 0, 1, 1], [], []>} : vector<2x32xf32>, vector<32x32xf32>, vector<2x32xf32> -> vector<2x32xf32>
      %c1 = arith.constant 1 : index
      %c0_34 = arith.constant 0 : index
      %46 = vector.load %arg5[%c1, %c0_34] : memref<5x32xf32, #tpu.memory_space<vmem>>, vector<1x32xf32>
      %47 = vector.broadcast %46 : vector<1x32xf32> to vector<2x32xf32>
      %48 = arith.addf %45, %47 : vector<2x32xf32>
      %cst_35 = arith.constant 0.00999999977 : f32
      %49 = vector.broadcast %cst_35 : f32 to vector<2x32xf32>
      %50 = arith.mulf %49, %48 : vector<2x32xf32>
      %51 = arith.maximumf %48, %50 : vector<2x32xf32>
      %c48 = arith.constant 48 : index
      %c0_36 = arith.constant 0 : index
      %52 = vector.load %arg4[%c48, %c0_36] : memref<80x32xf32, #tpu.memory_space<vmem>>, vector<32x16xf32>
      %cst_37 = arith.constant dense<0.000000e+00> : vector<2x16xf32>
      %53 = tpu.matmul %51, %52, %cst_37 {dimension_numbers = #tpu.dot_dimension_numbers<[1], [0], [0], [1], [0, 0, 1, 1], [], []>} : vector<2x32xf32>, vector<32x16xf32>, vector<2x16xf32> -> vector<2x16xf32>
      %c2 = arith.constant 2 : index
      %c0_38 = arith.constant 0 : index
      %54 = vector.load %arg5[%c2, %c0_38] : memref<5x32xf32, #tpu.memory_space<vmem>>, vector<1x16xf32>
      %55 = vector.broadcast %54 : vector<1x16xf32> to vector<2x16xf32>
      %56 = arith.addf %53, %55 : vector<2x16xf32>
      %cst_39 = arith.constant 0.00999999977 : f32
      %57 = vector.broadcast %cst_39 : f32 to vector<2x16xf32>
      %58 = arith.mulf %57, %56 : vector<2x16xf32>
      %59 = arith.maximumf %56, %58 : vector<2x16xf32>
      %cst_40 = arith.constant dense<0.000000e+00> : vector<2xf32>
      %60 = vector.multi_reduction <add>, %59, %cst_40 [1] : vector<2x16xf32> to vector<2xf32>
      %61 = vector.shape_cast %60 : vector<2xf32> to vector<2x1xf32>
      %cst_41 = arith.constant 1.600000e+01 : f32
      %62 = vector.broadcast %cst_41 : f32 to vector<2x1xf32>
      %63 = arith.divf %61, %62 : vector<2x1xf32>
      %64 = vector.broadcast %63 : vector<2x1xf32> to vector<2x16xf32>
      %65 = arith.subf %59, %64 : vector<2x16xf32>
      %66 = arith.mulf %65, %65 : vector<2x16xf32>
      %cst_42 = arith.constant dense<0.000000e+00> : vector<2xf32>
      %67 = vector.multi_reduction <add>, %66, %cst_42 [1] : vector<2x16xf32> to vector<2xf32>
      %68 = vector.shape_cast %67 : vector<2xf32> to vector<2x1xf32>
      %cst_43 = arith.constant 1.600000e+01 : f32
      %69 = vector.broadcast %cst_43 : f32 to vector<2x1xf32>
      %70 = arith.divf %68, %69 : vector<2x1xf32>
      %71 = vector.broadcast %63 : vector<2x1xf32> to vector<2x16xf32>
      %72 = arith.subf %59, %71 : vector<2x16xf32>
      %cst_44 = arith.constant 9.99999974E-6 : f32
      %73 = vector.broadcast %cst_44 : f32 to vector<2x1xf32>
      %74 = arith.addf %70, %73 : vector<2x1xf32>
      %75 = math.rsqrt %74 : vector<2x1xf32>
      %76 = vector.broadcast %75 : vector<2x1xf32> to vector<2x16xf32>
      %77 = arith.mulf %72, %76 : vector<2x16xf32>
      %c3 = arith.constant 3 : index
      %c0_45 = arith.constant 0 : index
      %78 = vector.load %arg5[%c3, %c0_45] : memref<5x32xf32, #tpu.memory_space<vmem>>, vector<1x16xf32>
      %79 = vector.broadcast %78 : vector<1x16xf32> to vector<2x16xf32>
      %80 = arith.mulf %77, %79 : vector<2x16xf32>
      %c4 = arith.constant 4 : index
      %c0_46 = arith.constant 0 : index
      %81 = vector.load %arg5[%c4, %c0_46] : memref<5x32xf32, #tpu.memory_space<vmem>>, vector<1x16xf32>
      %82 = vector.broadcast %81 : vector<1x16xf32> to vector<2x16xf32>
      %83 = arith.addf %80, %82 : vector<2x16xf32>
      %c0_47 = arith.constant 0 : index
      %c0_48 = arith.constant 0 : index
      %84 = vector.load %arg6[%c0_47, %c0_48] : memref<2x16xf32, #tpu.memory_space<vmem>>, vector<2x16xf32>
      tpu.vector_store %arg6[%c0_47, %c0_48], %83 {strides = array<i32>} : memref<2x16xf32, #tpu.memory_space<vmem>>, vector<2x16xf32>,
    } else {
    }
    return
  }
  func.func @transform_0(%arg0: i32) -> (i32, i32) {
    %c0_i32 = arith.constant 0 : i32
    %c0_i32_0 = arith.constant 0 : i32
    return %c0_i32, %arg0 : i32, i32
  }
  func.func @transform_1(%arg0: i32) -> (i32, i32) {
    %c0_i32 = arith.constant 0 : i32
    %c0_i32_0 = arith.constant 0 : i32
    return %c0_i32, %arg0 : i32, i32
  }
  func.func @transform_2(%arg0: i32) -> (i32, i32) {
    %c0_i32 = arith.constant 0 : i32
    %c0_i32_0 = arith.constant 0 : i32
    %c0_i32_1 = arith.constant 0 : i32
    return %c0_i32, %c0_i32_0 : i32, i32
  }
  func.func @transform_3(%arg0: i32) -> (i32, i32) {
    %c0_i32 = arith.constant 0 : i32
    %c0_i32_0 = arith.constant 0 : i32
    %c0_i32_1 = arith.constant 0 : i32
    return %c0_i32, %c0_i32_0 : i32, i32
  }
  func.func @transform_4(%arg0: i32) -> (i32, i32) {
    %c0_i32 = arith.constant 0 : i32
    %c0_i32_0 = arith.constant 0 : i32
    %c0_i32_1 = arith.constant 0 : i32
    return %c0_i32, %c0_i32_0 : i32, i32
  }
  func.func @transform_5(%arg0: i32) -> (i32, i32) {
    %c0_i32 = arith.constant 0 : i32
    %c0_i32_0 = arith.constant 0 : i32
    %c0_i32_1 = arith.constant 0 : i32
    return %c0_i32, %c0_i32_0 : i32, i32
  }
}

</mosaic_0001>

<bundles_post_ra>
// kernel: tpu_custom_call.1
= control target key start
LH: loop header
LB: loop body
LE: loop exit
PB: predicated region body
PF: predicated region fallthrough
CT: control target
= control target key end

     0   :  { %v29_v0 = vlaneseq  ;;  %vm27_vm0 = vcmask 1024   ;;  %s866_s0 = inlined_call_operand.vmem [shape: s32[1,512], index: 0, kind: input, shape index: {}]   ;;  %s867_s1 = inlined_call_operand.vmem [shape: f32[4,512], index: 1, kind: input, shape index: {}]   ;;  %s868_s2 = inlined_call_operand.vmem [shape: f32[2,4], index: 2, kind: input, shape index: {}]   ;;  %s869_s3 = inlined_call_operand.vmem [shape: f32[80,32], index: 3, kind: input, shape index: {}]   ;;  %s870_s4 = inlined_call_operand.vmem [shape: f32[5,32], index: 4, kind: input, shape index: {}]   ;;  %s871_s5 = inlined_call_operand.hbm [shape: f32[2,16], index: 5, kind: output, shape index: {}]  }
   0x1   :  { %v32_v1 = vld [vmem:[%s867_s1] sm:$0xff]  ;;  %v33_v2 = vld [vmem:[%s867_s1 + $0x8] sm:$0xff] }
   0x2   :  { %v64_v3 = vcombine.high %v32_v1, %v32_v1  ;;  %v65_v4 = vcombine.high %v33_v2, %v33_v2 }
   0x3   :  { %10 = vsyncpa [#allocation5], 0  ;;  %v30_v5 = vshrl.u32 %v29_v0, 7  ;;  %v730_v6 = vmov 0.0   ;;  %v31_v7 = vld [vmem:[%s866_s0] sm:$0xf] }
   0x4   :  { %28 = vst.msk [vmem:[#allocation3] sm:$0x3] %vm27_vm0, %v730_v6  ;;  %68 = vmatprep.subr.mxu0 %v64_v3  ;;  %138 = vmatprep.subr.mxu1 %v65_v4  ;;  %vm208_vm1 = vcmask 1041408   ;;  %v731_v20 = vmov 1.0   ;;  %v732_v28 = vmov 0   ;;  %vm25_vm6 = vcmask 25600  }
   0x5   :  { %v36_v8 = vsub.s32 0, %v30_v5  ;;  %v40_v9 = vsub.s32 1, %v30_v5  ;;  %v44_v10 = vsub.s32 2, %v30_v5  ;;  %v48_v11 = vsub.s32 3, %v30_v5  ;;  %69 = vmatpush1.xpose.msra.mxu0 %v32_v1  ;;  %139 = vmatpush1.xpose.msra.mxu1 %v33_v2  ;;  %26 = vst.msk [vmem:[#allocation2] sm:$0x3] %vm25_vm6, %v730_v6 }
   0x6   :  { %649 = vmatprep.subr.mxu0 %v730_v6  ;;  %654 = vmatprep.subr.mxu1 %v730_v6  ;;  %vm247_vm7 = vcmask 1043456   ;;  %v241_v34 = vld [vmem:[%s869_s3] sm:$0xf]  ;;  %v242_v35 = vld [vmem:[%s869_s3 + $0x8] sm:$0xf]  ;;  %vm733_vm8 = vmmov 0  }
   0x7   :  { %v37_v12 = vrot.slane %v31_v7, %v36_v8  ;;  %v41_v13 = vrot.slane %v31_v7, %v40_v9  ;;  %v45_v14 = vrot.slane %v31_v7, %v44_v10  ;;  %v49_v15 = vrot.slane %v31_v7, %v48_v11  ;;  %699 = vset.pattern.permute.xlu0 %v732_v28  ;;  %v240_v36 = vld [vmem:[%s868_s2] sm:$0x3]  ;;  %v405_v48 = vld [vmem:[%s869_s3 + $0x10] sm:$0xff]  ;;  %v406_v49 = vld [vmem:[%s869_s3 + $0x18] sm:$0xff]  ;;  %s735_s25 = smov [#allocation4]  }
   0x8   :  { %vm243_vm9 = vcmask 31744   ;;  %v682_v51 = vpack.c.bf16 %v406_v49, %v405_v48  ;;  %v734_v53 = vmov 0.0|0.0   ;;  %v407_v54 = vld [vmem:[%s869_s3 + $0x20] sm:$0xff]  ;;  %v408_v55 = vld [vmem:[%s869_s3 + $0x28] sm:$0xff]  ;;  %vm414_vm10 = vcmask 261120   ;;  %v490_v0 = vld [vmem:[%s869_s3 + $0x30] sm:$0xff] }
   0x9   :  { %vm50_vm2 = vcmp.eq.s32.totalorder %v30_v5, %v37_v12  ;;  %vm51_vm3 = vcmp.eq.s32.totalorder %v30_v5, %v41_v13  ;;  %vm52_vm4 = vcmp.eq.s32.totalorder %v30_v5, %v45_v14  ;;  %vm53_vm5 = vcmp.eq.s32.totalorder %v30_v5, %v49_v15  ;;  %v628_v58 = vld [vmem:[%s870_s4] ss:$0 sm:$0xff]  ;;  %v491_v1 = vld [vmem:[%s869_s3 + $0x38] sm:$0xff]  ;;  %v493_v4 = vld [vmem:[%s869_s3 + $0x48] sm:$0xff]  ;;  %s608_s26 = sshll.u32 %s735_s25, 4  ;;  %s609_s26 = int_to_ptr.vmem [resolvable:$true] %s608_s26 }
   0xa   :  { %v616_v16 = vsel %vm50_vm2, 1.0, %v730_v6  ;;  %v617_v17 = vsel %vm51_vm3, 1.0, %v730_v6  ;;  %v618_v18 = vsel %vm52_vm4, 1.0, %v730_v6  ;;  %v619_v19 = vsel %vm53_vm5, 1.0, %v730_v6  ;;  %620 = vmatprep.mubr.msk.f32.mxu0 %vm51_vm3, %v731_v20  ;;  %622 = vmatprep.mubr.msk.f32.mxu1 %vm53_vm5, %v731_v20  ;;  %v492_v3 = vld [vmem:[%s869_s3 + $0x40] sm:$0xff]  ;;  %s706_s27 = scalar_lea.vmem %s609_s26, 32  ;;  %p711_p1 = scmp.lt.s32.totalorder %s609_s26, %s609_s26 }
   0xb   :  { %v209_v21 = vsel %vm208_vm1, %v616_v16, 0.0  ;;  %v210_v22 = vsel %vm208_vm1, %v617_v17, 0.0  ;;  %v212_v23 = vsel %vm208_vm1, %v618_v18, 0.0  ;;  %621 = vmatmul.mubr.msk.f32.vlgmr.msra.gmra.mrb[0].mxu0 %vm50_vm2, %v731_v20  ;;  %623 = vmatmul.mubr.msk.f32.vlgmr.msra.gmra.mrb[0].mxu1 %vm52_vm4, %v731_v20  ;;  %v214_v25 = vsel %vm208_vm1, %v619_v19, 0.0  ;;  %v223_v29 = vld [vmem:[#allocation3] sm:$0x3]  ;;  %p707_p0 = scmp.ne.s32.totalorder %s609_s26, %s706_s27  ;;  %p712_p2 = scmp.lt.s32.totalorder %s706_s27, %s706_s27 }
   0xc   :  { %v211_v24 = vadd.f32 %v210_v22, %v209_v21  ;;  %655 = vmatpush3.msk.msra.mxu1 %vm247_vm7, %v241_v34  ;;  %656 = vmatprep.mubr.msk.f32.mxu1 %vm733_vm8, %v730_v6  ;;  %v219_v39 = vld [vmem:[#allocation2] sm:$0x3]  ;;  %v685_v56 = vpack.c.bf16 %v408_v55, %v407_v54  ;;  %v688_v2 = vpack.c.bf16 %v491_v1, %v490_v0  ;;  %v631_v12 = vld [vmem:[%s870_s4 + $0x2] ss:$0 sm:$0xff]  ;;  %vm574_vm11 = vcmask 123904  }
   0xd   :  { %650 = vmatpush3.msk.msra.mxu0 %vm247_vm7, %v242_v35  ;;  %651 = vmatprep.mubr.msk.f32.mxu0 %vm733_vm8, %v730_v6  ;;  %v691_v5 = vpack.c.bf16 %v493_v4, %v492_v3  ;;  %v633_v28 = vld [vmem:[%s870_s4 + $0x3] ss:$0 sm:$0xff]  ;;  %p713_p3 = por %p712_p2, %p711_p1 }
   0xe   :  { %v213_v26 = vadd.f32 %v212_v23, %v211_v24  ;;  %681 = vmatprep.subr.bf16.mxu0 %v734_v53  ;;  %687 = vmatprep.subr.bf16.mxu1 %v734_v53 }
   0xf   :  { %657 = vmatmul.mubr.msk.f32.vlgmr.msra.gmra.mrb[2].mxu1 %vm243_vm9, %v240_v36  ;;  %p714_p4 = pnand %p713_p3, %p707_p0 }
  0x10   :  { %v215_v27 = vadd.f32 %v214_v25, %v213_v26  ;;  %678 = vmatprep.mubr.msk.f32.mxu1 %vm733_vm8, %v730_v6  ;;  %689 = vmatpush3.bf16.msra.mxu1 %v688_v2 }
  0x11   :  { %690 = vmatprep.subr.bf16.mxu1 %v734_v53 }
  0x12   :  { %216 = vadd.xlane.f32.xlu0 %v215_v27 }
  0x14   :  { %692 = vmatpush3.bf16.msra.mxu1 %v691_v5 }
  0x9f   :  { %v217_v30 = vpop.xlane.xlu0 %216 }
  0xa0   :  { %v224_v31 = vadd.f32 %v223_v29, %v217_v30  ;;  %v634_v30 = vld [vmem:[%s870_s4 + $0x4] ss:$0 sm:$0xff] }
  0xa2   :  { %226 = vst.msk [vmem:[#allocation3] sm:$0x3] %vm27_vm0, %v224_v31 }
  0xa9   :  { %v231_v32 = vld [vmem:[#allocation3] sm:$0x3] }
  0xaa   :  { %v232_v33 = vmax.f32 %v231_v32, 1.0 }
  0xac   :  { %235 = vperm.xlu0 %699, %v232_v33  }
  0xde   :  { %v134_v37 = vpop.f32.mrb[0].mxu0  ;;  %v204_v38 = vpop.f32.mrb[0].mxu1 }
  0xdf   :  { %v205_v40 = vadd.f32 %v204_v38, %v134_v37  ;;  %v136_v41 = vpop.f32.mrb[1].mxu0  ;;  %v206_v42 = vpop.f32.mrb[1].mxu1 }
  0xe1   :  { %v220_v43 = vadd.f32 %v219_v39, %v205_v40 }
  0xe2   :  { %v393_v50 = vpop.f32.mrb[2].mxu1 }
  0xe3   :  { %222 = vst.msk [vmem:[#allocation2] sm:$0x3] %vm25_vm6, %v220_v43  ;;  %v658_v52 = vpop.f32.mrb[3].mxu1 }
  0xea   :  { %v230_v45 = vld [vmem:[#allocation2] sm:$0x3] }
 0x12b   :  { %v236_v44 = vpop.permute.xlu0 %235 }
 0x12c   :  { %702 = vrcp.f32 %v236_v44 }
 0x136   :  { %v703_v46 = vpop.eup %702 }
 0x137   :  { %v239_v47 = vmul.f32 %v703_v46, %v230_v45 }
 0x139   :  { %652 = vmatmul.mubr.msk.f32.vlgmr.msra.gmra.mrb[2].mxu0 %vm243_vm9, %v239_v47 }
 0x13a   :  { %667 = vmatprep.mubr.msk.f32.mxu0 %vm733_vm8, %v730_v6  ;;  %683 = vmatpush3.bf16.msra.mxu0 %v682_v51  ;;  %v629_v6 = vld [vmem:[%s870_s4 + $0x1] ss:$0 sm:$0xff] }
 0x13b   :  { %684 = vmatprep.subr.bf16.mxu0 %v734_v53 }
 0x13e   :  { %686 = vmatpush3.bf16.msra.mxu0 %v685_v56 }
 0x20c   :  { %v317_v57 = vpop.f32.mrb[2].mxu0 }
 0x20d   :  { %v394_v59 = vadd.f32 %v393_v50, %v317_v57  ;;  %v653_v60 = vpop.f32.mrb[3].mxu0 }
 0x20f   :  { %v402_v61 = vadd.f32 %v628_v58, %v394_v59 }
 0x211   :  { %v403_v62 = vmul.f32 0.01, %v402_v61 }
 0x213   :  { %v404_v63 = vmax.f32 %v402_v61, %v403_v62 }
 0x215   :  { %668 = vmatmul.mubr.msk.f32.vlgmr.msra.gmra.mrb[4].mxu0 %vm414_vm10, %v404_v63 }
 0x2e8   :  { %v484_v7 = vpop.f32.mrb[4].mxu0 }
 0x2e9   :  { %v485_v8 = vadd.f32 %v629_v6, %v484_v7  ;;  %v669_v9 = vpop.f32.mrb[5].mxu0 }
 0x2eb   :  { %v488_v10 = vmul.f32 0.01, %v485_v8 }
 0x2ed   :  { %v489_v11 = vmax.f32 %v485_v8, %v488_v10 }
 0x2ef   :  { %679 = vmatmul.mubr.msk.f32.vlgmr.msra.gmra.mrb[4].mxu1 %vm414_vm10, %v489_v11 }
 0x3c2   :  { %v568_v13 = vpop.f32.mrb[4].mxu1 }
 0x3c3   :  { %v569_v14 = vadd.f32 %v631_v12, %v568_v13  ;;  %v680_v15 = vpop.f32.mrb[5].mxu1 }
 0x3c5   :  { %v572_v16 = vmul.f32 0.01, %v569_v14 }
 0x3c7   :  { %v573_v17 = vmax.f32 %v569_v14, %v572_v16 }
 0x3c9   :  { %v575_v18 = vsel %vm574_vm11, %v573_v17, 0.0 }
 0x3ca   :  { %576 = vadd.xlane.f32.xlu1 %v575_v18 }
 0x457   :  { %v577_v19 = vpop.xlane.xlu1 %576 }
 0x458   :  { %v579_v20 = vmul.f32 0.0625, %v577_v19 }
 0x45a   :  { %v580_v21 = vsub.f32 %v573_v17, %v579_v20 }
 0x45c   :  { %v581_v22 = vmul.f32 %v580_v21, %v580_v21 }
 0x45e   :  { %v582_v23 = vsel %vm574_vm11, %v581_v22, 0.0 }
 0x45f   :  { %583 = vadd.xlane.f32.xlu1 %v582_v23 }
 0x4ec   :  { %v584_v24 = vpop.xlane.xlu1 %583 }
 0x4ed   :  { %v585_v25 = vmul.f32 0.0625, %v584_v24 }
 0x4ef   :  { %v586_v26 = vadd.f32 1e-05, %v585_v25 }
 0x4f1   :  { %704 = vrsqrt.f32 %v586_v26 }
 0x4fb   :  { %v705_v27 = vpop.eup %704 }
 0x4fc   :  { %v588_v29 = vmul.f32 %v705_v27, %v580_v21 }
 0x4fe   :  { %v594_v31 = vmul.f32 %v633_v28, %v588_v29 }
 0x500   :  { %v600_v32 = vadd.f32 %v634_v30, %v594_v31 }
 0x502   :  { %601 = vst.msk [vmem:[#allocation4] sm:$0x3] %vm574_vm11, %v600_v32 }
 0x503   :  { %717 = shalt.err (!%p714_p4)
}
 0x504   :  { %s718_s29 = scalar_lea.hbm %s871_s5, 32 }
 0x505   :  { %p719_p5 = scmp.ne.s32.totalorder %s871_s5, %s718_s29  ;;  %p722_p6 = scmp.lt.u32.totalorder %s718_s29, %s871_s5 }
 0x507   :  { %p724_p7 = pnand %p722_p6, %p719_p5 }
 0x509   :  { %727 = shalt.err (!%p724_p7)
}
 0x50a   :  { %611 = dma.vmem_to_hbm [thread:$0]  %s609_s26, 32, %s871_s5, [#allocation5]  }
 0x50b   :  { %728 = dma.done.wait [#allocation5], 32  }
 0x50c   :  { %729 = vsyncadd [#allocation5], 4294967264 }
 0x50d   :  { %615 = vsyncpa [#allocation5], 1 }

</bundles_post_ra>
